<compile_context>
chip_gen: v5e
topology: v5e:2x2
jax: 0.10.0
libtpu: 0.0.40
codegen_flags: <defaults>
</compile_context>

<pallas_src>
import functools

import jax
import jax.numpy as jnp
from jax import lax
from jax.experimental import pallas as pl
from jax.experimental.pallas import tpu as pltpu

LANES = 128


def _projection_kernel(k_ref, p_ref, o_ref, *, eps, height, width, normalized):
    """One (batch, pixel-block) grid step.

    k_ref : [N, 16]          SMEM, flattened 4x4 intrinsics (whole array)
    p_ref : [1, 4, S, 128]   VMEM, homogeneous points (plane-major, sublane-dense)
    o_ref : [1, 2, S, 128]   VMEM, output x / y planes
    """
    n = pl.program_id(0)

    X = p_ref[0, 0]          # [S, 128]
    Y = p_ref[0, 1]
    Z = p_ref[0, 2]
    Wh = p_ref[0, 3]

    # Fold the normalization scale into the K row scalars (scalar math only);
    # the "- 1" shift is applied after the perspective divide.
    sx = (2.0 / (width - 1)) if normalized else 1.0
    sy = (2.0 / (height - 1)) if normalized else 1.0

    k00 = k_ref[n, 0] * sx
    k01 = k_ref[n, 1] * sx
    k02 = k_ref[n, 2] * sx
    k03 = k_ref[n, 3] * sx
    k10 = k_ref[n, 4] * sy
    k11 = k_ref[n, 5] * sy
    k12 = k_ref[n, 6] * sy
    k13 = k_ref[n, 7] * sy
    k20 = k_ref[n, 8]
    k21 = k_ref[n, 9]
    k22 = k_ref[n, 10]
    k23 = k_ref[n, 11]

    # 3x4 contraction as scalar-broadcast VPU FMAs (no MXU involvement).
    denom = k20 * X + k21 * Y + k22 * Z + k23 * Wh + eps
    recip = pl.reciprocal(denom, approx=False)  # exact; approx=True ~ 1e-4 rel err

    x = (k00 * X + k01 * Y + k02 * Z + k03 * Wh) * recip
    y = (k10 * X + k11 * Y + k12 * Z + k13 * Wh) * recip

    if normalized:
        x = x - 1.0
        y = y - 1.0

    o_ref[0, 0] = x.astype(o_ref.dtype)
    o_ref[0, 1] = y.astype(o_ref.dtype)


def projection(points3d, K, height, width, eps=1e-7, normalized=True,
               block_rows=64, channels_last=True):
    """Pallas implementation of Projection.forward.

    Args:
      points3d:  [N, 4, H*W] float32 homogeneous 3D points.
      K:         [N, 4, 4]   float32 camera intrinsics.
      block_rows: sublane-rows per block (block = block_rows * 128 pixels).
      channels_last: if True (default, matches the torch module) returns
        [N, H, W, 2]; if False returns planar [N, 2, H, W] and skips the
        extra HBM pass of the transpose.
    """
    N, four, HW = points3d.shape
    assert four == 4 and HW == height * width
    if normalized:
        assert height > 1 and width > 1, "normalized=True needs H > 1 and W > 1"

    num_rows = pl.cdiv(HW, LANES)
    s_block = min(block_rows, num_rows)           # full-dim or multiple of 8
    num_rows_pad = pl.cdiv(num_rows, s_block) * s_block
    hw_pad = num_rows_pad * LANES

    pts = points3d
    if hw_pad != HW:
        pts = jnp.pad(pts, ((0, 0), (0, 0), (0, hw_pad - HW)))
    pts = pts.reshape(N, 4, num_rows_pad, LANES)  # free view (contiguous split)

    k_flat = K.reshape(N, 16)

    kernel = functools.partial(
        _projection_kernel, eps=eps, height=height, width=width,
        normalized=normalized)

    out = pl.pallas_call(
        kernel,
        out_shape=jax.ShapeDtypeStruct((N, 2, num_rows_pad, LANES), jnp.float32),
        grid_spec=pltpu.PrefetchScalarGridSpec(
            num_scalar_prefetch=0,
            grid=(N, num_rows_pad // s_block),
            in_specs=[
                # Whole K table lives in SMEM; scalars read per grid step.
                pl.BlockSpec(memory_space=pltpu.MemorySpace.SMEM),
                pl.BlockSpec((1, 4, s_block, LANES),
                             lambda n, t: (n, 0, t, 0)),
            ],
            out_specs=pl.BlockSpec((1, 2, s_block, LANES),
                                   lambda n, t: (n, 0, t, 0)),
        ),
        compiler_params=pltpu.CompilerParams(
            dimension_semantics=("parallel", "parallel")),
    )(k_flat, pts)

    xy = out.reshape(N, 2, hw_pad)[:, :, :HW].reshape(N, 2, height, width)
    if channels_last:
        # Matches torch .permute(0, 2, 3, 1); a separate XLA pass, not kernel time.
        xy = xy.transpose(0, 2, 3, 1)
    return xy


def _reference(points3d, K, height, width, eps=1e-7, normalized=True):
    N = points3d.shape[0]
    pts2d = jnp.matmul(K[:, :3, :], points3d, precision=lax.Precision.HIGHEST)
    xy = pts2d[:, :2, :] / (pts2d[:, 2:3, :] + eps)
    xy = xy.reshape(N, 2, height, width).transpose(0, 2, 3, 1)
    if normalized:
        xy = xy / jnp.array([width - 1, height - 1], dtype=jnp.float32)
        xy = (xy - 0.5) * 2
    return xy


if __name__ == "__main__":
    N, H, W = 2, 16, 16
    HW = H * W
    key = jax.random.PRNGKey(0)
    k1, k2 = jax.random.split(key)

    # Homogeneous 3D points: keep depth positive-ish so the divide is tame.
    points3d = jax.random.normal(k1, (N, 4, HW), dtype=jnp.float32)
    points3d = points3d.at[:, 2, :].set(jnp.abs(points3d[:, 2, :]) + 1.0)  # z > 0
    points3d = points3d.at[:, 3, :].set(1.0)                               # w = 1

    # Deterministic synthetic pinhole-style intrinsics (4x4) + small jitter.
    fx, fy, cx, cy = 20.0, 22.0, (W - 1) / 2.0, (H - 1) / 2.0
    K_single = jnp.array(
        [[fx, 0.0, cx, 0.0],
         [0.0, fy, cy, 0.0],
         [0.0, 0.0, 1.0, 0.0],
         [0.0, 0.0, 0.0, 1.0]], dtype=jnp.float32)
    K = jnp.tile(K_single[None], (N, 1, 1))
    K = K + 0.01 * jax.random.normal(k2, (N, 4, 4), dtype=jnp.float32)

    # Normalized path (default module behavior).
    out = jax.block_until_ready(projection(points3d, K, H, W, normalized=True))
    ref = _reference(points3d, K, H, W, normalized=True)
    assert out.shape == (N, H, W, 2)
    assert jnp.allclose(out, ref, rtol=1e-4, atol=1e-4)

    # Unnormalized path.
    out2 = jax.block_until_ready(projection(points3d, K, H, W, normalized=False))
    ref2 = _reference(points3d, K, H, W, normalized=False)
    assert jnp.allclose(out2, ref2, rtol=1e-4, atol=1e-3)

    print("KERNEL_OK")
</pallas_src>

<mosaic_0001>
module attributes {stable_mosaic.version = 11 : i64} {
  func.func @_projection_kernel(%arg0: i32, %arg1: i32, %arg2: memref<2x16xf32, #tpu.memory_space<smem>>, %arg3: memref<1x4x2x128xf32, #tpu.memory_space<vmem>>, %arg4: memref<1x2x2x128xf32, #tpu.memory_space<vmem>>) attributes {dimension_semantics = [#tpu.dimension_semantics<parallel>, #tpu.dimension_semantics<parallel>], iteration_bounds = array<i64: 2, 1>, scalar_prefetch = 0 : i64, scratch_operands = 0 : i64, tpu.core_type = #tpu.core_type<tc>, window_params = [{transform_indices = @transform_0, window_bounds = array<i64: 2, 16>}, {transform_indices = @transform_1, window_bounds = array<i64: 1, 4, 2, 128>}, {transform_indices = @transform_2, window_bounds = array<i64: 1, 2, 2, 128>}]} {
    %c0 = arith.constant 0 : index
    %c0_0 = arith.constant 0 : index
    %c0_1 = arith.constant 0 : index
    %c0_2 = arith.constant 0 : index
    %0 = vector.load %arg3[%c0, %c0_0, %c0_1, %c0_2] : memref<1x4x2x128xf32, #tpu.memory_space<vmem>>, vector<1x1x2x128xf32>
    %1 = vector.shape_cast %0 : vector<1x1x2x128xf32> to vector<2x128xf32>
    %c0_3 = arith.constant 0 : index
    %c1 = arith.constant 1 : index
    %c0_4 = arith.constant 0 : index
    %c0_5 = arith.constant 0 : index
    %2 = vector.load %arg3[%c0_3, %c1, %c0_4, %c0_5] : memref<1x4x2x128xf32, #tpu.memory_space<vmem>>, vector<1x1x2x128xf32>
    %3 = vector.shape_cast %2 : vector<1x1x2x128xf32> to vector<2x128xf32>
    %c0_6 = arith.constant 0 : index
    %c2 = arith.constant 2 : index
    %c0_7 = arith.constant 0 : index
    %c0_8 = arith.constant 0 : index
    %4 = vector.load %arg3[%c0_6, %c2, %c0_7, %c0_8] : memref<1x4x2x128xf32, #tpu.memory_space<vmem>>, vector<1x1x2x128xf32>
    %5 = vector.shape_cast %4 : vector<1x1x2x128xf32> to vector<2x128xf32>
    %c0_9 = arith.constant 0 : index
    %c3 = arith.constant 3 : index
    %c0_10 = arith.constant 0 : index
    %c0_11 = arith.constant 0 : index
    %6 = vector.load %arg3[%c0_9, %c3, %c0_10, %c0_11] : memref<1x4x2x128xf32, #tpu.memory_space<vmem>>, vector<1x1x2x128xf32>
    %7 = vector.shape_cast %6 : vector<1x1x2x128xf32> to vector<2x128xf32>
    %8 = arith.index_cast %arg0 : i32 to index
    %c0_12 = arith.constant 0 : index
    %9 = memref.load %arg2[%8, %c0_12] : memref<2x16xf32, #tpu.memory_space<smem>>
    %cst = arith.constant 0.13333334 : f32
    %10 = arith.mulf %9, %cst : f32
    %11 = arith.index_cast %arg0 : i32 to index
    %c1_13 = arith.constant 1 : index
    %12 = memref.load %arg2[%11, %c1_13] : memref<2x16xf32, #tpu.memory_space<smem>>
    %cst_14 = arith.constant 0.13333334 : f32
    %13 = arith.mulf %12, %cst_14 : f32
    %14 = arith.index_cast %arg0 : i32 to index
    %c2_15 = arith.constant 2 : index
    %15 = memref.load %arg2[%14, %c2_15] : memref<2x16xf32, #tpu.memory_space<smem>>
    %cst_16 = arith.constant 0.13333334 : f32
    %16 = arith.mulf %15, %cst_16 : f32
    %17 = arith.index_cast %arg0 : i32 to index
    %c3_17 = arith.constant 3 : index
    %18 = memref.load %arg2[%17, %c3_17] : memref<2x16xf32, #tpu.memory_space<smem>>
    %cst_18 = arith.constant 0.13333334 : f32
    %19 = arith.mulf %18, %cst_18 : f32
    %20 = arith.index_cast %arg0 : i32 to index
    %c4 = arith.constant 4 : index
    %21 = memref.load %arg2[%20, %c4] : memref<2x16xf32, #tpu.memory_space<smem>>
    %cst_19 = arith.constant 0.13333334 : f32
    %22 = arith.mulf %21, %cst_19 : f32
    %23 = arith.index_cast %arg0 : i32 to index
    %c5 = arith.constant 5 : index
    %24 = memref.load %arg2[%23, %c5] : memref<2x16xf32, #tpu.memory_space<smem>>
    %cst_20 = arith.constant 0.13333334 : f32
    %25 = arith.mulf %24, %cst_20 : f32
    %26 = arith.index_cast %arg0 : i32 to index
    %c6 = arith.constant 6 : index
    %27 = memref.load %arg2[%26, %c6] : memref<2x16xf32, #tpu.memory_space<smem>>
    %cst_21 = arith.constant 0.13333334 : f32
    %28 = arith.mulf %27, %cst_21 : f32
    %29 = arith.index_cast %arg0 : i32 to index
    %c7 = arith.constant 7 : index
    %30 = memref.load %arg2[%29, %c7] : memref<2x16xf32, #tpu.memory_space<smem>>
    %cst_22 = arith.constant 0.13333334 : f32
    %31 = arith.mulf %30, %cst_22 : f32
    %32 = arith.index_cast %arg0 : i32 to index
    %c8 = arith.constant 8 : index
    %33 = memref.load %arg2[%32, %c8] : memref<2x16xf32, #tpu.memory_space<smem>>
    %34 = arith.index_cast %arg0 : i32 to index
    %c9 = arith.constant 9 : index
    %35 = memref.load %arg2[%34, %c9] : memref<2x16xf32, #tpu.memory_space<smem>>
    %36 = arith.index_cast %arg0 : i32 to index
    %c10 = arith.constant 10 : index
    %37 = memref.load %arg2[%36, %c10] : memref<2x16xf32, #tpu.memory_space<smem>>
    %38 = arith.index_cast %arg0 : i32 to index
    %c11 = arith.constant 11 : index
    %39 = memref.load %arg2[%38, %c11] : memref<2x16xf32, #tpu.memory_space<smem>>
    %40 = vector.broadcast %33 : f32 to vector<2x128xf32>
    %41 = arith.mulf %40, %1 : vector<2x128xf32>
    %42 = vector.broadcast %35 : f32 to vector<2x128xf32>
    %43 = arith.mulf %42, %3 : vector<2x128xf32>
    %44 = arith.addf %41, %43 : vector<2x128xf32>
    %45 = vector.broadcast %37 : f32 to vector<2x128xf32>
    %46 = arith.mulf %45, %5 : vector<2x128xf32>
    %47 = arith.addf %44, %46 : vector<2x128xf32>
    %48 = vector.broadcast %39 : f32 to vector<2x128xf32>
    %49 = arith.mulf %48, %7 : vector<2x128xf32>
    %50 = arith.addf %47, %49 : vector<2x128xf32>
    %cst_23 = arith.constant 1.000000e-07 : f32
    %51 = vector.broadcast %cst_23 : f32 to vector<2x128xf32>
    %52 = arith.addf %50, %51 : vector<2x128xf32>
    %53 = tpu.reciprocal %52 : vector<2x128xf32> -> vector<2x128xf32>
    %54 = vector.broadcast %10 : f32 to vector<2x128xf32>
    %55 = arith.mulf %54, %1 : vector<2x128xf32>
    %56 = vector.broadcast %13 : f32 to vector<2x128xf32>
    %57 = arith.mulf %56, %3 : vector<2x128xf32>
    %58 = arith.addf %55, %57 : vector<2x128xf32>
    %59 = vector.broadcast %16 : f32 to vector<2x128xf32>
    %60 = arith.mulf %59, %5 : vector<2x128xf32>
    %61 = arith.addf %58, %60 : vector<2x128xf32>
    %62 = vector.broadcast %19 : f32 to vector<2x128xf32>
    %63 = arith.mulf %62, %7 : vector<2x128xf32>
    %64 = arith.addf %61, %63 : vector<2x128xf32>
    %65 = arith.mulf %64, %53 : vector<2x128xf32>
    %66 = vector.broadcast %22 : f32 to vector<2x128xf32>
    %67 = arith.mulf %66, %1 : vector<2x128xf32>
    %68 = vector.broadcast %25 : f32 to vector<2x128xf32>
    %69 = arith.mulf %68, %3 : vector<2x128xf32>
    %70 = arith.addf %67, %69 : vector<2x128xf32>
    %71 = vector.broadcast %28 : f32 to vector<2x128xf32>
    %72 = arith.mulf %71, %5 : vector<2x128xf32>
    %73 = arith.addf %70, %72 : vector<2x128xf32>
    %74 = vector.broadcast %31 : f32 to vector<2x128xf32>
    %75 = arith.mulf %74, %7 : vector<2x128xf32>
    %76 = arith.addf %73, %75 : vector<2x128xf32>
    %77 = arith.mulf %76, %53 : vector<2x128xf32>
    %cst_24 = arith.constant 1.000000e+00 : f32
    %78 = vector.broadcast %cst_24 : f32 to vector<2x128xf32>
    %79 = arith.subf %65, %78 : vector<2x128xf32>
    %cst_25 = arith.constant 1.000000e+00 : f32
    %80 = vector.broadcast %cst_25 : f32 to vector<2x128xf32>
    %81 = arith.subf %77, %80 : vector<2x128xf32>
    %c0_26 = arith.constant 0 : index
    %c0_27 = arith.constant 0 : index
    %c0_28 = arith.constant 0 : index
    %c0_29 = arith.constant 0 : index
    %82 = vector.load %arg4[%c0_26, %c0_27, %c0_28, %c0_29] : memref<1x2x2x128xf32, #tpu.memory_space<vmem>>, vector<1x1x2x128xf32>
    %83 = vector.shape_cast %82 : vector<1x1x2x128xf32> to vector<2x128xf32>
    %84 = vector.shape_cast %79 : vector<2x128xf32> to vector<1x1x2x128xf32>
    tpu.vector_store %arg4[%c0_26, %c0_27, %c0_28, %c0_29], %84 {strides = array<i32>} : memref<1x2x2x128xf32, #tpu.memory_space<vmem>>, vector<1x1x2x128xf32>,
    %c0_30 = arith.constant 0 : index
    %c1_31 = arith.constant 1 : index
    %c0_32 = arith.constant 0 : index
    %c0_33 = arith.constant 0 : index
    %85 = vector.load %arg4[%c0_30, %c1_31, %c0_32, %c0_33] : memref<1x2x2x128xf32, #tpu.memory_space<vmem>>, vector<1x1x2x128xf32>
    %86 = vector.shape_cast %85 : vector<1x1x2x128xf32> to vector<2x128xf32>
    %87 = vector.shape_cast %81 : vector<2x128xf32> to vector<1x1x2x128xf32>
    tpu.vector_store %arg4[%c0_30, %c1_31, %c0_32, %c0_33], %87 {strides = array<i32>} : memref<1x2x2x128xf32, #tpu.memory_space<vmem>>, vector<1x1x2x128xf32>,
    return
  }
  func.func @transform_0(%arg0: i32, %arg1: i32) -> (i32, i32) {
    %c0_i32 = arith.constant 0 : i32
    %c0_i32_0 = arith.constant 0 : i32
    %c0_i32_1 = arith.constant 0 : i32
    return %c0_i32, %c0_i32_0 : i32, i32
  }
  func.func @transform_1(%arg0: i32, %arg1: i32) -> (i32, i32, i32, i32) {
    %c0_i32 = arith.constant 0 : i32
    %c0_i32_0 = arith.constant 0 : i32
    %c0_i32_1 = arith.constant 0 : i32
    return %arg0, %c0_i32, %arg1, %c0_i32_0 : i32, i32, i32, i32
  }
  func.func @transform_2(%arg0: i32, %arg1: i32) -> (i32, i32, i32, i32) {
    %c0_i32 = arith.constant 0 : i32
    %c0_i32_0 = arith.constant 0 : i32
    %c0_i32_1 = arith.constant 0 : i32
    return %arg0, %c0_i32, %arg1, %c0_i32_0 : i32, i32, i32, i32
  }
}

</mosaic_0001>

<bundles_post_ra>
// kernel: tpu_custom_call.1
= control target key start
LH: loop header
LB: loop body
LE: loop exit
PB: predicated region body
PF: predicated region fallthrough
CT: control target
= control target key end

     0   :  { %s837_s0 = inlined_call_operand.hbm [shape: f32[2,16], index: 0, kind: input, shape index: {}]   ;;  %s838_s1 = inlined_call_operand.hbm [shape: f32[2,4,2,128], index: 1, kind: input, shape index: {}]   ;;  %s839_s2 = inlined_call_operand.hbm [shape: f32[2,2,2,128], index: 2, kind: output, shape index: {}]  }
   0x1   :  { %841 = sst [smem:[#allocation12_spill]] %s837_s0 }
   0x2   :  { %842 = sst [smem:[#allocation13_spill]] %s838_s1 }
   0x3   :  { %7 = vsyncpa [#allocation5], 0 }
   0x4   :  { %8 = vsyncpa [#allocation3], 0 }
   0x5   :  { %10 = vsyncpa [#allocation3 + $0x1], 0 }
   0x6   :  { %11 = vsyncpa [#allocation4], 0 }
   0x7   :  { %13 = vsyncpa [#allocation4 + $0x1], 0  ;;  %s661_s9 = smov 0   ;;  %s663_s10 = smov 0  }
   0x8   :  { %s665_s11 = smov 0   ;;  %s667_s12 = smov 0  }
   0x9   :  { %s669_s13 = smov 0   ;;  %s671_s14 = smov 0  }
   0xa LB: > { %s403_s15 = sadd.s32 4294967295, %s639_s14   ;;  %s404_s16 = sadd.s32 4294967294, %s639_s14   ;;  %s639_s14 = sphi %s671_s14, %s19_s14   ;;  %s635_s13 = sphi %s669_s13, %s858_s13   ;;  %s631_s12 = sphi %s667_s12, %s857_s12   ;;  %s627_s11 = sphi %s665_s11, %s856_s11   ;;  %s623_s10 = sphi %s663_s10, %s855_s10   ;;  %s619_s9 = sphi %s661_s9, %s854_s9  }
   0xb   : > { %s61_s17 = sadd.s32 1, %s627_s11  ;;  %p68_p0 = scmp.ne.s32.totalorder %s627_s11, %s623_s10 }
   0xc   : > { %p69_p1 = scmp.eq.s32.totalorder %s639_s14, 0  ;;  %p74_p2 = scmp.ne.s32.totalorder %s623_s10, %s619_s9 }
   0xd   : > { %p699_p3 = scmp.eq.s32.totalorder %s403_s15, 0  ;;  %p100_p4 = scmp.eq.s32.totalorder %s403_s15, 1 }
   0xe   : > { %p703_p5 = por %p69_p1, %p68_p0  ;;  %p106_p6 = scmp.eq.s32.totalorder %s404_s16, 1 }
   0xf   : > { %p709_p7 = por %p699_p3, %p74_p2  ;;  %p713_p8 = por %p100_p4, %p68_p0 }
  0x10   : > { %p717_p9 = por %p106_p6, %p74_p2  ;;  %p405_p10 = scmp.ge.s32.totalorder %s639_s14, 1 }
  0x11   : > { %p113_p11 = scmp.lt.s32.totalorder %s639_s14, 3  ;;  %s848_s0 = sld [smem:[#allocation12_spill]] }
  0x12   : > { %p407_p13 = scmp.ge.s32.totalorder %s639_s14, 2  ;;  %p450_p0 = scmp.lt.s32.totalorder %s639_s14, 2 }
  0x13   : > { %p726_p12 = pnand %p405_p10, %p113_p11  ;;  %s31_s28 = sadd.s32 1, %s635_s13 }
  0x14   : > { %p736_p2 = pnand %p450_p0, %p703_p5  ;;  %p33_p6 = scmp.ge.s32.totalorder %s31_s28, 2 }
  0x15   : > { %p437_p1 = pneg %p726_p12  ;;  %s136_s29 = sand.u32 1, %s627_s11  }
  0x16   : > { %s641_s30 = smov [#allocation2]   ;;  %s860_s28 = smov (%p33_p6, %s31_s28), 0 }
  0x17   : > { %s125_s25 = sshll.u32 %s848_s0, 4  ;;  %p438_p4 = pnand %p437_p1, %p699_p3  ;;  %s126_s25 = int_to_ptr.hbm [resolvable:$true] %s125_s25 }
  0x18   : > { %851 = sst [smem:[#allocation11_spill]] %s860_s28  ;;  %s408_s3 = sshll.u32 %s136_s29, 3 }
  0x19   : > { %440 = dma.hbm_to_smem (!%p438_p4), %s126_s25, 32, %s641_s30, [#allocation5]  }
  0x1a   : > { %s56_s4 = ssub.s32 %s635_s13, %s860_s28  ;;  %s427_s5 = sshll.u32 %s635_s13, 3 }
  0x1b   : > { %p59_p10 = scmp.eq.s32.totalorder %s56_s4, 0  ;;  %s852_s1 = sld [smem:[#allocation13_spill]] }
  0x1c   : > { %s140_s15 = scalar_lea.vmem [#allocation6], %s408_s3  ;;  %s137_s24 = scalar_lea.sflag [#allocation3], %s136_s29 }
  0x1d   : > { %s149_s16 = sshll.u32 %s140_s15, 4  ;;  %s642_s25 = smov 32   ;;  %s150_s16 = int_to_ptr.vmem [resolvable:$true] %s149_s16 }
  0x1e   : > { %s755_s19 = scalar_select %p59_p10, %s627_s11, %s61_s17  }
  0x1f   : > { %s643_s30 = smov 2   ;;  %161 = sbr.rel (%p726_p12) target bundleno = 91 (0x5b), region = 28 }
  0x21   : > { %s146_s8 = scalar_lea.hbm %s852_s1, %s427_s5 }
  0x22   : > { %s147_s23 = sshll.u32 %s146_s8, 4  ;;  %s148_s23 = int_to_ptr.hbm [resolvable:$true] %s147_s23 }
  0x23   : > { %444 = dma.hbm_to_vmem [thread:$0]  (!%p736_p2), %s148_s23, 128, %s150_s16, %s137_s24, %s642_s25, %s642_s25, %s643_s30  }
  0x24   : > { %606 = dma.done.wait (%p699_p3), [#allocation5], 32  }
  0x25   : > { %608 = vsyncadd (%p699_p3), [#allocation5], 4294967264  ;;  %s766_s17 = sand.u32 1, %s623_s10  }
  0x26   : > { %s413_s29 = sshll.u32 %s766_s17, 3  ;;  %s169_s3 = scalar_lea.sflag [#allocation3], %s766_s17 }
  0x27   : > { %s172_s4 = scalar_lea.vmem [#allocation6], %s413_s29 }
  0x28   : > { %610 = dma.done.wait (%p709_p7), %s169_s3, 128  }
  0x29   : > { %612 = vsyncadd (%p709_p7), %s169_s3, 4294967168 }
  0x2a   : > { %178 = sfence }
  0x2b   : > { %s775_s26 = sshll.u32 %s631_s12, 7  ;;  %v195_v0 = vld [vmem:[%s172_s4] sm:$0x3]  ;;  %v415_v1 = vld [vmem:[%s172_s4 + $0x2] sm:$0x3] }
  0x2c   : > { %s205_s18 = sadd.s32 1, %s775_s26  ;;  %s779_s27 = sld [smem:[#allocation2 + %s775_s26]]  ;;  %v416_v2 = vld [vmem:[%s172_s4 + $0x4] sm:$0x3]  ;;  %v417_v4 = vld [vmem:[%s172_s4 + $0x6] sm:$0x3] }
  0x2d   : > { %s226_s5 = sadd.s32 8, %s775_s26  ;;  %s782_s6 = sld [smem:[#allocation2 + %s205_s18]] }
  0x2e   : > { %s228_s20 = sadd.s32 9, %s775_s26  ;;  %s227_s7 = sld [smem:[#allocation2 + %s226_s5]] }
  0x2f   : > { %s230_s8 = sadd.s32 10, %s775_s26  ;;  %s208_s15 = sadd.s32 2, %s775_s26 }
  0x30   : > { %s229_s16 = sld [smem:[#allocation2 + %s228_s20]]  ;;  %s232_s24 = sadd.s32 11, %s775_s26 }
  0x31   : > { %s231_s23 = sld [smem:[#allocation2 + %s230_s8]]  ;;  %s211_s29 = sadd.s32 3, %s775_s26 }
  0x32   : > { %s233_s25 = sld [smem:[#allocation2 + %s232_s24]]  ;;  %s214_s3 = sadd.s32 4, %s775_s26 }
  0x33   : > { %s788_s30 = sld [smem:[#allocation2 + %s208_s15]]  ;;  %s217_s18 = sadd.s32 5, %s775_s26 }
  0x34   : > { %v234_v3 = vstv %s227_s7  ;;  %s215_s5 = sld [smem:[#allocation2 + %s214_s3]]  ;;  %s220_s20 = sadd.s32 6, %s775_s26 }
  0x35   : > { %v235_v5 = vmul.f32 %v234_v3, %v195_v0  ;;  %s218_s8 = sld [smem:[#allocation2 + %s217_s18]]  ;;  %s223_s24 = sadd.s32 7, %s775_s26 }
  0x36   : > { %v236_v6 = vstv %s229_s16  ;;  %s221_s15 = sld [smem:[#allocation2 + %s220_s20]]  ;;  %s204_s0 = smul.f32 0.13333334, %s779_s27 }
  0x37   : > { %v237_v7 = vmul.f32 %v415_v1, %v236_v6  ;;  %v239_v8 = vstv %s231_s23  ;;  %s212_s1 = sld [smem:[#allocation2 + %s211_s29]]  ;;  %s207_s7 = smul.f32 0.13333334, %s782_s6 }
  0x38   : > { %v240_v9 = vmul.f32 %v416_v2, %v239_v8  ;;  %v242_v10 = vstv %s233_s25  ;;  %s224_s4 = sld [smem:[#allocation2 + %s223_s24]]  ;;  %v260_v15 = vstv %s204_s0  ;;  %s414_s0 = sshll.u32 %s766_s17, 2 }
  0x39   : > { %v238_v11 = vadd.f32 %v237_v7, %v235_v5  ;;  %v243_v12 = vmul.f32 %v417_v4, %v242_v10  ;;  %s210_s3 = smul.f32 0.13333334, %s788_s30  ;;  %v262_v16 = vstv %s207_s7  ;;  %v261_v20 = vmul.f32 %v260_v15, %v195_v0  ;;  %s194_s30 = scalar_lea.vmem [#allocation7], %s414_s0 }
  0x3a   : > { %s216_s28 = smul.f32 0.13333334, %s215_s5  ;;  %v263_v21 = vmul.f32 %v415_v1, %v262_v16  ;;  %s303_s29 = sshll.u32 %s194_s30, 4  ;;  %s304_s29 = int_to_ptr.vmem [resolvable:$true] %s303_s29 }
  0x3b   : > { %v241_v13 = vadd.f32 %v240_v9, %v238_v11  ;;  %s219_s16 = smul.f32 0.13333334, %s218_s8  ;;  %v265_v22 = vstv %s210_s3  ;;  %s573_s24 = scalar_lea.hbm %s839_s2, 8 }
  0x3c   : > { %s222_s23 = smul.f32 0.13333334, %s221_s15  ;;  %v272_v18 = vstv %s216_s28  ;;  %v264_v26 = vadd.f32 %v263_v21, %v261_v20  ;;  %v266_v27 = vmul.f32 %v416_v2, %v265_v22 }
  0x3d   : > { %v244_v14 = vadd.f32 %v243_v12, %v241_v13  ;;  %v274_v19 = vstv %s219_s16  ;;  %s213_s25 = smul.f32 0.13333334, %s212_s1  ;;  %v273_v23 = vmul.f32 %v272_v18, %v195_v0  ;;  %s428_s1 = sshll.u32 %s631_s12, 2 }
  0x3e   : > { %v275_v24 = vmul.f32 %v415_v1, %v274_v19  ;;  %s225_s26 = smul.f32 0.13333334, %s224_s4  ;;  %v277_v25 = vstv %s222_s23  ;;  %v267_v37 = vadd.f32 %v266_v27, %v264_v26  ;;  %s302_s6 = scalar_lea.hbm %s839_s2, %s428_s1 }
  0x3f   : > { %v245_v17 = vadd.f32 1e-07, %v244_v14  ;;  %v268_v28 = vstv %s213_s25  ;;  %v278_v30 = vmul.f32 %v416_v2, %v277_v25  ;;  %s305_s18 = sshll.u32 %s302_s6, 4  ;;  %s290_s12 = scalar_lea.sflag [#allocation4], %s766_s17  ;;  %s306_s18 = int_to_ptr.hbm [resolvable:$true] %s305_s18 }
  0x40   : > { %v276_v29 = vadd.f32 %v275_v24, %v273_v23  ;;  %v280_v32 = vstv %s225_s26  ;;  %v269_v34 = vmul.f32 %v417_v4, %v268_v28  ;;  %s567_s5 = sshra.s32 %s306_s18, 4  ;;  %s568_s5 = int_to_ptr.hbm [resolvable:$true] %s567_s5 }
  0x41   : > { %506 = vrcp.f32 %v245_v17  ;;  %vm251_vm0 = vweird.f32 %v245_v17  ;;  %v255_v35 = vand.u32 2147483647, %v245_v17  ;;  %v257_v36 = vand.u32 2147483648, %v245_v17  ;;  %s569_s20 = scalar_lea.hbm %s568_s5, 4  ;;  %p574_p11 = scmp.lt.s32.totalorder %s568_s5, %s839_s2 }
  0x42   : > { %v279_v39 = vadd.f32 %v278_v30, %v276_v29  ;;  %v281_v40 = vmul.f32 %v417_v4, %v280_v32  ;;  %v270_v44 = vadd.f32 %v269_v34, %v267_v37  ;;  %p570_p3 = scmp.ne.s32.totalorder %s568_s5, %s569_s20  ;;  %p575_p12 = scmp.lt.s32.totalorder %s573_s24, %s569_s20 }
  0x43   : > { %v258_v42 = vor.u32 1.1754944e-38, %v257_v36  ;;  %vm256_vm3 = vcmp.eq.f32.partialorder %v255_v35, 8.507059e+37 }
  0x44   : > { %v282_v45 = vadd.f32 %v281_v40, %v279_v39  ;;  %p571_p5 = pnand %p570_p3, %p713_p8  ;;  %p576_p0 = por %p575_p12, %p574_p11 }
  0x46   : > { %p572_p7 = pneg %p571_p5 }
  0x47   : > { %v507_v31 = vpop.eup %506 }
  0x48   : > { %v247_v33 = vmul.f32 %v507_v31, %v245_v17  ;;  %vm252_vm1 = vweird.f32 %v507_v31  ;;  %p577_p1 = pnand %p576_p0, %p572_p7 }
  0x49   : > { %vm253_vm2 = vmor %vm251_vm0, %vm252_vm1 }
  0x4a   : > { %v248_v38 = vsub.f32 1.0, %v247_v33 }
  0x4c   : > { %v249_v41 = vmul.f32 %v507_v31, %v248_v38 }
  0x4e   : > { %v250_v43 = vadd.f32 %v507_v31, %v249_v41 }
  0x50   : > { %v254_v46 = vsel %vm253_vm2, %v507_v31, %v250_v43 }
  0x51   : > { %v259_v47 = vsel %vm256_vm3, %v258_v42, %v254_v46 }
  0x52   : > { %v271_v48 = vmul.f32 %v270_v44, %v259_v47  ;;  %v283_v49 = vmul.f32 %v282_v45, %v259_v47 }
  0x54   : > { %v419_v50 = vadd.f32 -1.0, %v271_v48  ;;  %v420_v51 = vadd.f32 -1.0, %v283_v49 }
  0x56   : > { %286 = vst [vmem:[%s194_s30] sm:$0x3] %v419_v50 }
  0x57   : > { %421 = vst [vmem:[%s194_s30 + $0x2] sm:$0x3] %v420_v51 }
  0x58   : > { %580 = shalt.err (!%p577_p1)
}
  0x59   : > { %s644_s17 = smov 32   ;;  %s645_s16 = smov 2  }
  0x5a   : > { %435 = dma.vmem_to_hbm [thread:$0]  (%p713_p8), %s304_s29, 64, %s306_s18, %s290_s12, %s644_s17, %s644_s17, %s645_s16  }
  0x5b PF: > { %s320_s3 = sand.u32 1, %s619_s9   ;;  %p446_p2 = pnand %p407_p13, %p717_p9 }
  0x5c   : > { %s321_s23 = scalar_lea.sflag [#allocation4], %s320_s3 }
  0x5d   : > { %p447_p4 = pneg %p446_p2 }
  0x5f   : > { %614 = dma.done.wait (%p447_p4), %s321_s23, 64  }
  0x60   : > { %616 = vsyncadd (%p447_p4), %s321_s23, 4294967232  ;;  %s19_s14 = sadd.s32 1, %s639_s14   ;;  %s853_s21 = sld [smem:[#allocation11_spill]] }
  0x61   : > { %p16_p6 = scmp.ge.s32.totalorder %s19_s14, 4   ;;  %s854_s9 = smov %s623_s10 }
  0x62   : > { %s855_s10 = smov %s627_s11  ;;  %s856_s11 = smov %s755_s19 }
  0x63   : > { %s857_s12 = smov %s635_s13  ;;  %18 = sbr.rel (!%p16_p6) target bundleno = 10 (0xa), region = 82 }
  0x66   : > { %s858_s13 = smov %s853_s21 }
  0x68   :  { %327 = vsyncpa [#allocation3], 1 }
  0x69   :  { %329 = vsyncpa [#allocation3 + $0x1], 1 }
  0x6a   :  { %330 = vsyncpa [#allocation4], 1 }
  0x6b   :  { %332 = vsyncpa [#allocation4 + $0x1], 1 }
  0x6c   :  { %333 = vsyncpa [#allocation5], 1 }
  0x6d   :  { %335 = vsyncpa [#allocation5 + $0x1], 1 }

</bundles_post_ra>
